<compile_context>
chip_gen: v5e
topology: v5e:2x2
jax: 0.10.0
libtpu: 0.0.40
codegen_flags: <defaults>
</compile_context>

<pallas_src>
import numpy as np
import jax
import jax.numpy as jnp
from jax import lax
from jax.experimental import pallas as pl
from jax.experimental.pallas import tpu as pltpu

FEAT0 = 8                      # channels (must equal 2*WS, see note above)
WS = 4                         # window_size
WS2 = WS * WS                  # 16 positions per window
K5 = WS + 1                    # strided-conv kernel size (5)
LANE = WS2 * FEAT0             # 128 = (window position, channel) packed on lanes
NC = 2 * WS + FEAT0            # 16 fused conv_x/conv_c output columns
PD = K5 * K5 * FEAT0           # 200 im2col taps for the strided convs (un-padded)
GRP = LANE // FEAT0            # 16 conv rows grouped per lane-dense output row
assert LANE == 128

VMEM_LIMIT = 32 * 1024 * 1024  # explicit scoped-VMEM cap (safe on v5e/v6e/v7x)


def _round_up(x, m):
    return ((x + m - 1) // m) * m


def _choose_block(total, target, *, min_block=16, min_steps=4):
    """Sublane-aligned (bf16 tile = 16 rows) block size.

    Large blocks amortize the ~0.35us fixed per-grid-step overhead; we keep at
    least `min_steps` grid steps when possible so both TensorCores (v7x) stay
    busy under dimension_semantics=('parallel',).
    """
    if total <= min_block:
        return min_block
    blk = min(target, _round_up(total, min_block))
    blk = max(min_block, (blk // min_block) * min_block)
    while blk > min_block and pl.cdiv(total, blk) < min_steps:
        blk = max(min_block, ((blk // 2) // min_block) * min_block)
    return blk


# ---------------------------------------------------------------------------
# Kernel A: conv_first (3x3, im2col matmul against a 16-way block-diagonal
# weight so the output is 128 lanes wide) + LeakyReLU(0.2).  bf16 in, f32 acc,
# bf16 out (downstream consumers re-quantize to bf16 anyway).
# ---------------------------------------------------------------------------
def conv_lrelu_kernel(p_ref, w_ref, b_ref, o_ref):
    acc = jnp.dot(p_ref[...], w_ref[...], preferred_element_type=jnp.float32)
    acc = acc + b_ref[...]
    o_ref[...] = jnp.maximum(acc, 0.2 * acc).astype(o_ref.dtype)


def conv_first_lrelu(patches_g, w_bd, b_bd, *, block_rows):
    Mg, Kd = patches_g.shape
    N = w_bd.shape[1]
    assert Mg % block_rows == 0
    return pl.pallas_call(
        conv_lrelu_kernel,
        out_shape=jax.ShapeDtypeStruct((Mg, N), jnp.bfloat16),
        grid=(Mg // block_rows,),
        in_specs=[
            pl.BlockSpec((block_rows, Kd), lambda i: (i, 0)),
            pl.BlockSpec((Kd, N), lambda i: (0, 0)),
            pl.BlockSpec((1, N), lambda i: (0, 0)),
        ],
        out_specs=pl.BlockSpec((block_rows, N), lambda i: (i, 0)),
        compiler_params=pltpu.CompilerParams(
            dimension_semantics=("parallel",),
            vmem_limit_bytes=VMEM_LIMIT),
    )(patches_g, w_bd, b_bd)


# ---------------------------------------------------------------------------
# Kernel B: fused window block, lane-dense.
#   One fused bf16 matmul for conv_x/conv_c (w_x|w_y|w_c) + grouped L2
#   normalize + ONE fused expansion matmul + ReLU-gated outer product
#   + LayerNorm + elementwise gating.
# Rows = windows; lanes = window_pos*C + channel (128 lanes, full vst).
# ---------------------------------------------------------------------------
def selfig_window_kernel(p_ref, xw_ref, wf_ref, bf_ref, gmat_ref,
                         ef_ref, avg_ref, gl_ref, bl_ref, o_ref):
    # fused conv_x / conv_c: columns = [w_x(4) | w_y(4) | w_c(8)]; bf16 -> f32
    ww = jnp.dot(p_ref[...], wf_ref[...],
                 preferred_element_type=jnp.float32) + bf_ref[...]      # (NWB, 16)

    # grouped L2 normalization (== torch F.normalize per slice, clamp 1e-12)
    ssum = jnp.dot(ww * ww, gmat_ref[...],
                   preferred_element_type=jnp.float32)                  # (NWB, 16)
    wwn = ww * lax.rsqrt(jnp.maximum(ssum, 1e-24))

    # single fused expansion matmul onto the (pos*C + ch) lane layout:
    #   e[:, 0:128]   = wxn[wr]   e[:, 128:256] = wyn[wc]   e[:, 256:384] = wcn[ch]
    e = jnp.dot(wwn, ef_ref[...], preferred_element_type=jnp.float32)   # (NWB, 384)
    gate = jnp.maximum(e[:, :LANE] * e[:, LANE:2 * LANE], 0.0) * e[:, 2 * LANE:]

    # LayerNorm over channels (eps=1e-5, biased variance) via block-diag
    # averaging.  Mean uses a bf16 MXU pass (exact: bf16 inputs x 1/8 weights,
    # f32 accumulation); variance stays a f32 matmul.
    # TODO(synk): once the input streams are assembled in-kernel (HBM fix),
    # move this reduction to the XLU (3x roll+add per 8-lane group).
    mu = jnp.dot(xw_ref[...], avg_ref[...], preferred_element_type=jnp.float32)
    d = xw_ref[...].astype(jnp.float32) - mu
    var = jnp.dot(d * d, avg_ref[...].astype(jnp.float32),
                  preferred_element_type=jnp.float32)
    x_ln = d * lax.rsqrt(var + 1e-5) * gl_ref[...] + bl_ref[...]

    o_ref[...] = gate * x_ln


def window_attention(patches, x_win, params, *, block_windows):
    N, PDk = patches.shape
    assert PDk == PD and x_win.shape == (N, LANE) and N % block_windows == 0
    return pl.pallas_call(
        selfig_window_kernel,
        out_shape=jax.ShapeDtypeStruct((N, LANE), jnp.float32),
        grid=(N // block_windows,),
        in_specs=[
            pl.BlockSpec((block_windows, PD), lambda i: (i, 0)),
            pl.BlockSpec((block_windows, LANE), lambda i: (i, 0)),
            pl.BlockSpec((PD, NC), lambda i: (0, 0)),
            pl.BlockSpec((1, NC), lambda i: (0, 0)),
            pl.BlockSpec((NC, NC), lambda i: (0, 0)),
            pl.BlockSpec((NC, 3 * LANE), lambda i: (0, 0)),
            pl.BlockSpec((LANE, LANE), lambda i: (0, 0)),
            pl.BlockSpec((1, LANE), lambda i: (0, 0)),
            pl.BlockSpec((1, LANE), lambda i: (0, 0)),
        ],
        out_specs=pl.BlockSpec((block_windows, LANE), lambda i: (i, 0)),
        compiler_params=pltpu.CompilerParams(
            dimension_semantics=("parallel",),
            vmem_limit_bytes=VMEM_LIMIT),
    )(patches, x_win, params["wf"], params["bf"], params["gmat"],
      params["efused"], params["avg"], params["gamma_lane"], params["beta_lane"])


# ---------------------------------------------------------------------------
# Full forward (glue: NCHW<->NHWC, padding, im2col / window reshapes)
# ---------------------------------------------------------------------------
def self_ig_block(x, params):
    b, c, h, w = x.shape
    assert c == FEAT0 and h % WS == 0 and w % WS == 0
    nh, nw = h // WS, w // WS

    # TODO(synk): NCHW<->NHWC entry transpose and the exit 6-D transpose are
    # full HBM relayout passes; an NHWC module boundary would remove both.
    x_nhwc = jnp.transpose(x, (0, 2, 3, 1)).astype(jnp.bfloat16)

    # conv_first im2col (3x3, pad 1, stride 1), grouped 16 rows -> 128-lane output
    # TODO(synk): tap assembly still im2col's in HBM (9x read amplification);
    # halo-block manual DMA inside the kernel would remove it for large images.
    xp = jnp.pad(x_nhwc, ((0, 0), (1, 1), (1, 1), (0, 0)))
    taps = [xp[:, dy:dy + h, dx:dx + w, :] for dy in range(3) for dx in range(3)]
    p0 = jnp.stack(taps, axis=3).reshape(b * h * w, 9 * c)

    M = b * h * w
    assert M % GRP == 0                      # guaranteed: h, w multiples of WS
    Mg = M // GRP
    p0g = p0.reshape(Mg, GRP * 9 * c)        # (Mg, 1152) bf16

    MBg = _choose_block(Mg, 1024)
    Mg_pad = _round_up(Mg, MBg)
    if Mg_pad != Mg:
        p0g = jnp.pad(p0g, ((0, Mg_pad - Mg), (0, 0)))
    yg = conv_first_lrelu(p0g, params["w1bd"], params["b1bd"], block_rows=MBg)
    y = yg[:Mg].reshape(b, h, w, c)          # bf16

    # strided 5x5 im2col (pad 2, stride WS) shared by conv_x / conv_c
    # TODO(synk): per-window halo assembly inside the window kernel would cut
    # the remaining ~2.5x HBM duplication of y (patches + x_win).
    yp = jnp.pad(y, ((0, 0), (2, 2), (2, 2), (0, 0)))
    taps5 = [yp[:, dy:dy + WS * (nh - 1) + 1:WS, dx:dx + WS * (nw - 1) + 1:WS, :]
             for dy in range(K5) for dx in range(K5)]
    patches = jnp.stack(taps5, axis=3).reshape(b * nh * nw, PD)   # (NWIN, 200) bf16

    # window features: rows = (b, nh, nw) windows, lanes = (wr*WS+wc)*C + ch
    x_win = (y.reshape(b, nh, WS, nw, WS, c)
              .transpose(0, 1, 3, 2, 4, 5)
              .reshape(b * nh * nw, LANE))                        # bf16

    NWIN = b * nh * nw
    NWB = _choose_block(NWIN, 1024)
    NWIN_pad = _round_up(NWIN, NWB)
    if NWIN_pad != NWIN:
        patches = jnp.pad(patches, ((0, NWIN_pad - NWIN), (0, 0)))
        x_win = jnp.pad(x_win, ((0, NWIN_pad - NWIN), (0, 0)))

    # keep the [:NWIN] slice — padded tail rows compute bias-driven garbage
    out_win = window_attention(patches, x_win, params, block_windows=NWB)[:NWIN]

    out = (out_win.reshape(b, nh, nw, WS, WS, c)
           .transpose(0, 5, 1, 3, 2, 4)
           .reshape(b, c, h, w))
    return out


# ---------------------------------------------------------------------------
# Parameter construction (deterministic, torch-like uniform init) + derived
# lane-dense / fused weights and constant expansion matrices.
# ---------------------------------------------------------------------------
def grouped_to_dense(Wg, groups):
    Wg = np.asarray(Wg)
    oc, icg, kh, kw = Wg.shape
    ic, ocg = icg * groups, oc // groups
    Wd = np.zeros((oc, ic, kh, kw), np.float32)
    for g in range(groups):
        Wd[g * ocg:(g + 1) * ocg, g * icg:(g + 1) * icg] = Wg[g * ocg:(g + 1) * ocg]
    return jnp.asarray(Wd)


def build_params(key):
    ks = jax.random.split(key, 8)

    def u(k, shape, fan_in):
        bound = 1.0 / np.sqrt(fan_in)
        return jax.random.uniform(k, shape, jnp.float32, -bound, bound)

    W1 = u(ks[0], (FEAT0, FEAT0, 3, 3), FEAT0 * 9)
    b1 = u(ks[1], (FEAT0,), FEAT0 * 9)
    Wx_g = u(ks[2], (2 * WS, FEAT0 // WS, K5, K5), (FEAT0 // WS) * K5 * K5)   # groups=WS
    bx = u(ks[3], (2 * WS,), (FEAT0 // WS) * K5 * K5)
    Wc_g = u(ks[4], (FEAT0, 1, K5, K5), K5 * K5)                              # groups=FEAT0
    bc = u(ks[5], (FEAT0,), K5 * K5)
    gamma = 1.0 + 0.1 * jax.random.normal(ks[6], (FEAT0,), jnp.float32)
    beta = 0.1 * jax.random.normal(ks[7], (FEAT0,), jnp.float32)

    # conv_first: im2col layout (row = (ky*3+kx)*C + ci), expanded to a 16-way
    # block-diagonal weight so 16 spatial positions share one matmul row.  bf16.
    w1f = jnp.transpose(W1, (2, 3, 1, 0)).reshape(9 * FEAT0, FEAT0)          # (72, 8)
    w1bd = jnp.kron(jnp.eye(GRP, dtype=jnp.float32), w1f).astype(jnp.bfloat16)
    b1bd = jnp.tile(b1, GRP).reshape(1, LANE)                                # f32

    # conv_x / conv_c fused into one (PD, 16) weight: cols = [w_x | w_y | w_c]
    Wx_dense = grouped_to_dense(Wx_g, WS)
    Wc_dense = grouped_to_dense(Wc_g, FEAT0)
    wxf = jnp.transpose(Wx_dense, (2, 3, 1, 0)).reshape(PD, 2 * WS)
    wcf = jnp.transpose(Wc_dense, (2, 3, 1, 0)).reshape(PD, FEAT0)
    wf = jnp.concatenate([wxf, wcf], axis=1).astype(jnp.bfloat16)            # (200, 16)
    bf = jnp.concatenate([bx, bc]).reshape(1, NC)                            # f32

    # constant grouping / expansion matrices (built once, passed as kernel inputs)
    grp_id = np.array([0] * WS + [1] * WS + [2] * FEAT0)
    gmat = (grp_id[:, None] == grp_id[None, :]).astype(np.float32)           # (16, 16)

    lane = np.arange(LANE)
    pos, ch = lane // FEAT0, lane % FEAT0
    ea = np.zeros((NC, LANE), np.float32)
    eb = np.zeros((NC, LANE), np.float32)
    ec = np.zeros((NC, LANE), np.float32)
    ea[pos // WS, lane] = 1.0                 # picks wxn[wr]    (fused cols 0..3)
    eb[WS + (pos % WS), lane] = 1.0           # picks wyn[wc]    (fused cols 4..7)
    ec[2 * WS + ch, lane] = 1.0               # picks wcn[ch]    (fused cols 8..15)
    efused = np.concatenate([ea, eb, ec], axis=1)                            # (16, 384)
    avg = (pos[:, None] == pos[None, :]).astype(np.float32) / FEAT0          # (128, 128)

    gamma_lane = jnp.tile(gamma, WS2).reshape(1, LANE)
    beta_lane = jnp.tile(beta, WS2).reshape(1, LANE)

    params = dict(
        w1bd=w1bd, b1bd=b1bd, wf=wf, bf=bf,
        gmat=jnp.asarray(gmat), efused=jnp.asarray(efused),
        avg=jnp.asarray(avg, dtype=jnp.bfloat16),   # 0 and 1/8: exact in bf16
        gamma_lane=gamma_lane, beta_lane=beta_lane,
    )
    raw = (W1, b1, Wx_g, bx, Wc_g, bc, gamma, beta)
    return params, raw


# ---------------------------------------------------------------------------
# Pure-JAX f32 reference (mirrors the PyTorch forward) for verification
# ---------------------------------------------------------------------------
def reference_forward(x, raw):
    W1, b1, Wx_g, bx, Wc_g, bc, gamma, beta = raw
    b, c, h, w = x.shape
    nh, nw = h // WS, w // WS
    dn = ("NCHW", "OIHW", "NCHW")

    y = lax.conv_general_dilated(x, W1, (1, 1), ((1, 1), (1, 1)),
                                 dimension_numbers=dn) + b1[None, :, None, None]
    y = jnp.where(y >= 0, y, 0.2 * y)
    wxy = lax.conv_general_dilated(y, Wx_g, (WS, WS), ((2, 2), (2, 2)), dimension_numbers=dn,
                                   feature_group_count=WS) + bx[None, :, None, None]
    wc = lax.conv_general_dilated(y, Wc_g, (WS, WS), ((2, 2), (2, 2)), dimension_numbers=dn,
                                  feature_group_count=c) + bc[None, :, None, None]

    w_xy = jnp.transpose(wxy, (0, 2, 3, 1)).reshape(-1, 2 * WS)
    w_x, w_y = w_xy[:, :WS], w_xy[:, WS:]
    xr = jnp.transpose(y.reshape(b, c, nh, WS, nw, WS), (0, 2, 4, 3, 5, 1)).reshape(-1, WS2, c)
    mu = xr.mean(-1, keepdims=True)
    var = ((xr - mu) ** 2).mean(-1, keepdims=True)
    xr = (xr - mu) / jnp.sqrt(var + 1e-5) * gamma + beta

    def l2n(v):
        return v / jnp.maximum(jnp.sqrt(jnp.sum(v * v, -1, keepdims=True)), 1e-12)

    att = (l2n(w_x)[:, :, None] * l2n(w_y)[:, None, :]).reshape(-1, WS2)
    att = jnp.maximum(att, 0.0)
    w_c = jnp.transpose(wc, (0, 2, 3, 1)).reshape(-1, 2 * WS)
    out = (att[:, :, None] * l2n(w_c)[:, None, :]) * xr
    return (out.reshape(b, nh, nw, WS, WS, c)
               .transpose(0, 5, 1, 3, 2, 4)
               .reshape(b, c, h, w))


if __name__ == "__main__":
    key = jax.random.PRNGKey(0)
    kp, kx = jax.random.split(key)
    params, raw = build_params(kp)

    x = jax.random.normal(kx, (2, FEAT0, 16, 16), jnp.float32)   # NCHW like PyTorch

    out = jax.block_until_ready(jax.jit(self_ig_block)(x, params))
    ref = jax.block_until_ready(reference_forward(x, raw))
    # bf16 activation/weight streaming -> loosened tolerance vs the f32 reference.
    np.testing.assert_allclose(np.asarray(out, np.float32), np.asarray(ref),
                               rtol=5e-2, atol=5e-2)

    print("KERNEL_OK")
</pallas_src>

<mosaic_0001>
module attributes {stable_mosaic.version = 11 : i64} {
  func.func @conv_lrelu_kernel(%arg0: i32, %arg1: memref<16x1152xbf16, #tpu.memory_space<vmem>>, %arg2: memref<1152x128xbf16, #tpu.memory_space<vmem>>, %arg3: memref<1x128xf32, #tpu.memory_space<vmem>>, %arg4: memref<16x128xbf16, #tpu.memory_space<vmem>>) attributes {dimension_semantics = [#tpu.dimension_semantics<parallel>], iteration_bounds = array<i64: 2>, scalar_prefetch = 0 : i64, scratch_operands = 0 : i64, tpu.core_type = #tpu.core_type<tc>, window_params = [{transform_indices = @transform_0, window_bounds = array<i64: 16, 1152>}, {pipeline_mode = #tpu.pipeline_mode<synchronous>, transform_indices = @transform_1, window_bounds = array<i64: 1152, 128>}, {pipeline_mode = #tpu.pipeline_mode<synchronous>, transform_indices = @transform_2, window_bounds = array<i64: 1, 128>}, {transform_indices = @transform_3, window_bounds = array<i64: 16, 128>}]} {
    %c0 = arith.constant 0 : index
    %c0_0 = arith.constant 0 : index
    %0 = vector.load %arg1[%c0, %c0_0] : memref<16x1152xbf16, #tpu.memory_space<vmem>>, vector<16x1152xbf16>
    %c0_1 = arith.constant 0 : index
    %c0_2 = arith.constant 0 : index
    %1 = vector.load %arg2[%c0_1, %c0_2] : memref<1152x128xbf16, #tpu.memory_space<vmem>>, vector<1152x128xbf16>
    %cst = arith.constant dense<0.000000e+00> : vector<16x128xf32>
    %2 = tpu.matmul %0, %1, %cst {dimension_numbers = #tpu.dot_dimension_numbers<[1], [0], [0], [1], [0, 0, 1, 1], [], []>} : vector<16x1152xbf16>, vector<1152x128xbf16>, vector<16x128xf32> -> vector<16x128xf32>
    %c0_3 = arith.constant 0 : index
    %c0_4 = arith.constant 0 : index
    %3 = vector.load %arg3[%c0_3, %c0_4] : memref<1x128xf32, #tpu.memory_space<vmem>>, vector<1x128xf32>
    %4 = vector.broadcast %3 : vector<1x128xf32> to vector<16x128xf32>
    %5 = arith.addf %2, %4 : vector<16x128xf32>
    %cst_5 = arith.constant 2.000000e-01 : f32
    %6 = vector.broadcast %cst_5 : f32 to vector<16x128xf32>
    %7 = arith.mulf %6, %5 : vector<16x128xf32>
    %8 = arith.maximumf %5, %7 : vector<16x128xf32>
    %9 = arith.truncf %8 : vector<16x128xf32> to vector<16x128xbf16>
    %c0_6 = arith.constant 0 : index
    %c0_7 = arith.constant 0 : index
    %10 = vector.load %arg4[%c0_6, %c0_7] : memref<16x128xbf16, #tpu.memory_space<vmem>>, vector<16x128xbf16>
    tpu.vector_store %arg4[%c0_6, %c0_7], %9 {strides = array<i32>} : memref<16x128xbf16, #tpu.memory_space<vmem>>, vector<16x128xbf16>,
    return
  }
  func.func @transform_0(%arg0: i32) -> (i32, i32) {
    %c0_i32 = arith.constant 0 : i32
    %c0_i32_0 = arith.constant 0 : i32
    return %arg0, %c0_i32 : i32, i32
  }
  func.func @transform_1(%arg0: i32) -> (i32, i32) {
    %c0_i32 = arith.constant 0 : i32
    %c0_i32_0 = arith.constant 0 : i32
    %c0_i32_1 = arith.constant 0 : i32
    return %c0_i32, %c0_i32_0 : i32, i32
  }
  func.func @transform_2(%arg0: i32) -> (i32, i32) {
    %c0_i32 = arith.constant 0 : i32
    %c0_i32_0 = arith.constant 0 : i32
    %c0_i32_1 = arith.constant 0 : i32
    return %c0_i32, %c0_i32_0 : i32, i32
  }
  func.func @transform_3(%arg0: i32) -> (i32, i32) {
    %c0_i32 = arith.constant 0 : i32
    %c0_i32_0 = arith.constant 0 : i32
    return %arg0, %c0_i32 : i32, i32
  }
}

module attributes {stable_mosaic.version = 11 : i64} {
  func.func @selfig_window_kernel(%arg0: i32, %arg1: memref<16x200xbf16, #tpu.memory_space<vmem>>, %arg2: memref<16x128xbf16, #tpu.memory_space<vmem>>, %arg3: memref<200x16xbf16, #tpu.memory_space<vmem>>, %arg4: memref<1x16xf32, #tpu.memory_space<vmem>>, %arg5: memref<16x16xf32, #tpu.memory_space<vmem>>, %arg6: memref<16x384xf32, #tpu.memory_space<vmem>>, %arg7: memref<128x128xbf16, #tpu.memory_space<vmem>>, %arg8: memref<1x128xf32, #tpu.memory_space<vmem>>, %arg9: memref<1x128xf32, #tpu.memory_space<vmem>>, %arg10: memref<16x128xf32, #tpu.memory_space<vmem>>) attributes {dimension_semantics = [#tpu.dimension_semantics<parallel>], iteration_bounds = array<i64: 2>, scalar_prefetch = 0 : i64, scratch_operands = 0 : i64, tpu.core_type = #tpu.core_type<tc>, window_params = [{transform_indices = @transform_0, window_bounds = array<i64: 16, 200>}, {transform_indices = @transform_1, window_bounds = array<i64: 16, 128>}, {pipeline_mode = #tpu.pipeline_mode<synchronous>, transform_indices = @transform_2, window_bounds = array<i64: 200, 16>}, {pipeline_mode = #tpu.pipeline_mode<synchronous>, transform_indices = @transform_3, window_bounds = array<i64: 1, 16>}, {pipeline_mode = #tpu.pipeline_mode<synchronous>, transform_indices = @transform_4, window_bounds = array<i64: 16, 16>}, {pipeline_mode = #tpu.pipeline_mode<synchronous>, transform_indices = @transform_5, window_bounds = array<i64: 16, 384>}, {pipeline_mode = #tpu.pipeline_mode<synchronous>, transform_indices = @transform_6, window_bounds = array<i64: 128, 128>}, {pipeline_mode = #tpu.pipeline_mode<synchronous>, transform_indices = @transform_7, window_bounds = array<i64: 1, 128>}, {pipeline_mode = #tpu.pipeline_mode<synchronous>, transform_indices = @transform_8, window_bounds = array<i64: 1, 128>}, {transform_indices = @transform_9, window_bounds = array<i64: 16, 128>}]} {
    %c0 = arith.constant 0 : index
    %c0_0 = arith.constant 0 : index
    %0 = vector.load %arg1[%c0, %c0_0] : memref<16x200xbf16, #tpu.memory_space<vmem>>, vector<16x200xbf16>
    %c0_1 = arith.constant 0 : index
    %c0_2 = arith.constant 0 : index
    %1 = vector.load %arg3[%c0_1, %c0_2] : memref<200x16xbf16, #tpu.memory_space<vmem>>, vector<200x16xbf16>
    %cst = arith.constant dense<0.000000e+00> : vector<16x16xf32>
    %2 = tpu.matmul %0, %1, %cst {dimension_numbers = #tpu.dot_dimension_numbers<[1], [0], [0], [1], [0, 0, 1, 1], [], []>} : vector<16x200xbf16>, vector<200x16xbf16>, vector<16x16xf32> -> vector<16x16xf32>
    %c0_3 = arith.constant 0 : index
    %c0_4 = arith.constant 0 : index
    %3 = vector.load %arg4[%c0_3, %c0_4] : memref<1x16xf32, #tpu.memory_space<vmem>>, vector<1x16xf32>
    %4 = vector.broadcast %3 : vector<1x16xf32> to vector<16x16xf32>
    %5 = arith.addf %2, %4 : vector<16x16xf32>
    %6 = arith.mulf %5, %5 : vector<16x16xf32>
    %c0_5 = arith.constant 0 : index
    %c0_6 = arith.constant 0 : index
    %7 = vector.load %arg5[%c0_5, %c0_6] : memref<16x16xf32, #tpu.memory_space<vmem>>, vector<16x16xf32>
    %cst_7 = arith.constant dense<0.000000e+00> : vector<16x16xf32>
    %8 = tpu.matmul %6, %7, %cst_7 {dimension_numbers = #tpu.dot_dimension_numbers<[1], [0], [0], [1], [0, 0, 1, 1], [], []>} : vector<16x16xf32>, vector<16x16xf32>, vector<16x16xf32> -> vector<16x16xf32>
    %cst_8 = arith.constant 1.000000e-24 : f32
    %9 = vector.broadcast %cst_8 : f32 to vector<16x16xf32>
    %10 = arith.maximumf %8, %9 : vector<16x16xf32>
    %11 = math.rsqrt %10 : vector<16x16xf32>
    %12 = arith.mulf %5, %11 : vector<16x16xf32>
    %c0_9 = arith.constant 0 : index
    %c0_10 = arith.constant 0 : index
    %13 = vector.load %arg6[%c0_9, %c0_10] : memref<16x384xf32, #tpu.memory_space<vmem>>, vector<16x384xf32>
    %cst_11 = arith.constant dense<0.000000e+00> : vector<16x384xf32>
    %14 = tpu.matmul %12, %13, %cst_11 {dimension_numbers = #tpu.dot_dimension_numbers<[1], [0], [0], [1], [0, 0, 1, 1], [], []>} : vector<16x16xf32>, vector<16x384xf32>, vector<16x384xf32> -> vector<16x384xf32>
    %15 = vector.extract_strided_slice %14 {offsets = [0, 0], sizes = [16, 128], strides = [1, 1]} : vector<16x384xf32> to vector<16x128xf32>
    %16 = vector.extract_strided_slice %14 {offsets = [0, 128], sizes = [16, 128], strides = [1, 1]} : vector<16x384xf32> to vector<16x128xf32>
    %17 = arith.mulf %15, %16 : vector<16x128xf32>
    %cst_12 = arith.constant 0.000000e+00 : f32
    %18 = vector.broadcast %cst_12 : f32 to vector<16x128xf32>
    %19 = arith.maximumf %17, %18 : vector<16x128xf32>
    %20 = vector.extract_strided_slice %14 {offsets = [0, 256], sizes = [16, 128], strides = [1, 1]} : vector<16x384xf32> to vector<16x128xf32>
    %21 = arith.mulf %19, %20 : vector<16x128xf32>
    %c0_13 = arith.constant 0 : index
    %c0_14 = arith.constant 0 : index
    %22 = vector.load %arg2[%c0_13, %c0_14] : memref<16x128xbf16, #tpu.memory_space<vmem>>, vector<16x128xbf16>
    %c0_15 = arith.constant 0 : index
    %c0_16 = arith.constant 0 : index
    %23 = vector.load %arg7[%c0_15, %c0_16] : memref<128x128xbf16, #tpu.memory_space<vmem>>, vector<128x128xbf16>
    %cst_17 = arith.constant dense<0.000000e+00> : vector<16x128xf32>
    %24 = tpu.matmul %22, %23, %cst_17 {dimension_numbers = #tpu.dot_dimension_numbers<[1], [0], [0], [1], [0, 0, 1, 1], [], []>} : vector<16x128xbf16>, vector<128x128xbf16>, vector<16x128xf32> -> vector<16x128xf32>
    %c0_18 = arith.constant 0 : index
    %c0_19 = arith.constant 0 : index
    %25 = vector.load %arg2[%c0_18, %c0_19] : memref<16x128xbf16, #tpu.memory_space<vmem>>, vector<16x128xbf16>
    %26 = arith.extf %25 : vector<16x128xbf16> to vector<16x128xf32>
    %27 = arith.subf %26, %24 : vector<16x128xf32>
    %28 = arith.mulf %27, %27 : vector<16x128xf32>
    %c0_20 = arith.constant 0 : index
    %c0_21 = arith.constant 0 : index
    %29 = vector.load %arg7[%c0_20, %c0_21] : memref<128x128xbf16, #tpu.memory_space<vmem>>, vector<128x128xbf16>
    %30 = arith.extf %29 : vector<128x128xbf16> to vector<128x128xf32>
    %cst_22 = arith.constant dense<0.000000e+00> : vector<16x128xf32>
    %31 = tpu.matmul %28, %30, %cst_22 {dimension_numbers = #tpu.dot_dimension_numbers<[1], [0], [0], [1], [0, 0, 1, 1], [], []>} : vector<16x128xf32>, vector<128x128xf32>, vector<16x128xf32> -> vector<16x128xf32>
    %cst_23 = arith.constant 9.99999974E-6 : f32
    %32 = vector.broadcast %cst_23 : f32 to vector<16x128xf32>
    %33 = arith.addf %31, %32 : vector<16x128xf32>
    %34 = math.rsqrt %33 : vector<16x128xf32>
    %35 = arith.mulf %27, %34 : vector<16x128xf32>
    %c0_24 = arith.constant 0 : index
    %c0_25 = arith.constant 0 : index
    %36 = vector.load %arg8[%c0_24, %c0_25] : memref<1x128xf32, #tpu.memory_space<vmem>>, vector<1x128xf32>
    %37 = vector.broadcast %36 : vector<1x128xf32> to vector<16x128xf32>
    %38 = arith.mulf %35, %37 : vector<16x128xf32>
    %c0_26 = arith.constant 0 : index
    %c0_27 = arith.constant 0 : index
    %39 = vector.load %arg9[%c0_26, %c0_27] : memref<1x128xf32, #tpu.memory_space<vmem>>, vector<1x128xf32>
    %40 = vector.broadcast %39 : vector<1x128xf32> to vector<16x128xf32>
    %41 = arith.addf %38, %40 : vector<16x128xf32>
    %42 = arith.mulf %21, %41 : vector<16x128xf32>
    %c0_28 = arith.constant 0 : index
    %c0_29 = arith.constant 0 : index
    %43 = vector.load %arg10[%c0_28, %c0_29] : memref<16x128xf32, #tpu.memory_space<vmem>>, vector<16x128xf32>
    tpu.vector_store %arg10[%c0_28, %c0_29], %42 {strides = array<i32>} : memref<16x128xf32, #tpu.memory_space<vmem>>, vector<16x128xf32>,
    return
  }
  func.func @transform_0(%arg0: i32) -> (i32, i32) {
    %c0_i32 = arith.constant 0 : i32
    %c0_i32_0 = arith.constant 0 : i32
    return %arg0, %c0_i32 : i32, i32
  }
  func.func @transform_1(%arg0: i32) -> (i32, i32) {
    %c0_i32 = arith.constant 0 : i32
    %c0_i32_0 = arith.constant 0 : i32
    return %arg0, %c0_i32 : i32, i32
  }
  func.func @transform_2(%arg0: i32) -> (i32, i32) {
    %c0_i32 = arith.constant 0 : i32
    %c0_i32_0 = arith.constant 0 : i32
    %c0_i32_1 = arith.constant 0 : i32
    return %c0_i32, %c0_i32_0 : i32, i32
  }
  func.func @transform_3(%arg0: i32) -> (i32, i32) {
    %c0_i32 = arith.constant 0 : i32
    %c0_i32_0 = arith.constant 0 : i32
    %c0_i32_1 = arith.constant 0 : i32
    return %c0_i32, %c0_i32_0 : i32, i32
  }
  func.func @transform_4(%arg0: i32) -> (i32, i32) {
    %c0_i32 = arith.constant 0 : i32
    %c0_i32_0 = arith.constant 0 : i32
    %c0_i32_1 = arith.constant 0 : i32
    return %c0_i32, %c0_i32_0 : i32, i32
  }
  func.func @transform_5(%arg0: i32) -> (i32, i32) {
    %c0_i32 = arith.constant 0 : i32
    %c0_i32_0 = arith.constant 0 : i32
    %c0_i32_1 = arith.constant 0 : i32
    return %c0_i32, %c0_i32_0 : i32, i32
  }
  func.func @transform_6(%arg0: i32) -> (i32, i32) {
    %c0_i32 = arith.constant 0 : i32
    %c0_i32_0 = arith.constant 0 : i32
    %c0_i32_1 = arith.constant 0 : i32
    return %c0_i32, %c0_i32_0 : i32, i32
  }
  func.func @transform_7(%arg0: i32) -> (i32, i32) {
    %c0_i32 = arith.constant 0 : i32
    %c0_i32_0 = arith.constant 0 : i32
    %c0_i32_1 = arith.constant 0 : i32
    return %c0_i32, %c0_i32_0 : i32, i32
  }
  func.func @transform_8(%arg0: i32) -> (i32, i32) {
    %c0_i32 = arith.constant 0 : i32
    %c0_i32_0 = arith.constant 0 : i32
    %c0_i32_1 = arith.constant 0 : i32
    return %c0_i32, %c0_i32_0 : i32, i32
  }
  func.func @transform_9(%arg0: i32) -> (i32, i32) {
    %c0_i32 = arith.constant 0 : i32
    %c0_i32_0 = arith.constant 0 : i32
    return %arg0, %c0_i32 : i32, i32
  }
}

</mosaic_0001>

<bundles_post_ra>
// kernel: self_ig_block.2
= control target key start
LH: loop header
LB: loop body
LE: loop exit
PB: predicated region body
PF: predicated region fallthrough
CT: control target
= control target key end

     0   :  { %s1462_s12 = smov 0   ;;  %s1722_s0 = inlined_call_operand.vmem [shape: bf16[32,1152], index: 0, kind: input, shape index: {}]   ;;  %s1723_s1 = inlined_call_operand.vmem [shape: bf16[1152,128], index: 1, kind: input, shape index: {}]   ;;  %s1724_s2 = inlined_call_operand.vmem [shape: f32[1,128], index: 2, kind: input, shape index: {}]   ;;  %s1725_s3 = inlined_call_operand.vmem [shape: bf16[32,128], index: 3, kind: output, shape index: {}]  }
   0x1 LB: > { %s1003_s13 = sadd.s32 4294967295, %s1440_s12   ;;  %p1007_p0 = scmp.ge.s32.totalorder %s1440_s12, 1  ;;  %s1440_s12 = sphi %s1462_s12, %s13_s12  }
   0x2   : > { %p139_p1 = scmp.lt.s32.totalorder %s1440_s12, 3 }
   0x4   : > { %p140_p2 = pnand %p1007_p0, %p139_p1 }
   0x5   : > { %s1008_s11 = sshll.u32 (!%p140_p2), %s1003_s13, 1 }
   0x6   : > { %143 = sbr.rel (%p140_p2) target bundleno = 250 (0xfa), region = 32  ;;  %p165_p3 = scmp.lt.s32.totalorder (!%p140_p2), %s1008_s11, 3 }
   0xb   : > { %v1354_v0 = vld [vmem:[%s1723_s1 + $0x38] sm:$0xff]  ;;  %v1353_v4 = vld [vmem:[%s1723_s1 + $0x30] sm:$0xff]  ;;  %v1352_v8 = vld [vmem:[%s1723_s1 + $0x28] sm:$0xff]  ;;  %s1727_s11 = smov (!%p165_p3, %s1008_s11), 3 }
   0xc   : > { %v1370_v1 = vld [vmem:[%s1723_s1 + $0xb8] sm:$0xff]  ;;  %813 = vmatpush.bf16.msra.mxu0 %v1354_v0  ;;  %v1369_v5 = vld [vmem:[%s1723_s1 + $0xb0] sm:$0xff]  ;;  %v1368_v9 = vld [vmem:[%s1723_s1 + $0xa8] sm:$0xff]  ;;  %s1424_s10 = smul.u32 36, %s1727_s11 }
   0xd   : > { %v1362_v2 = vld [vmem:[%s1723_s1 + $0x78] sm:$0xff]  ;;  %841 = vmatpush.bf16.msra.mxu2 %v1370_v1  ;;  %v1361_v6 = vld [vmem:[%s1723_s1 + $0x70] sm:$0xff]  ;;  %v1360_v10 = vld [vmem:[%s1723_s1 + $0x68] sm:$0xff] }
   0xe   : > { %v1378_v3 = vld [vmem:[%s1723_s1 + $0xf8] sm:$0xff]  ;;  %827 = vmatpush.bf16.msra.mxu1 %v1362_v2  ;;  %v1377_v7 = vld [vmem:[%s1723_s1 + $0xf0] sm:$0xff]  ;;  %v1376_v11 = vld [vmem:[%s1723_s1 + $0xe8] sm:$0xff]  ;;  %s1560_s23 = scalar_lea.vmem %s1722_s0, %s1424_s10 }
   0xf   : > { %855 = vmatpush.bf16.msra.mxu3 %v1378_v3  ;;  %v1351_v12 = vld [vmem:[%s1723_s1 + $0x20] sm:$0xff]  ;;  %v1350_v16 = vld [vmem:[%s1723_s1 + $0x18] sm:$0xff]  ;;  %v1349_v20 = vld [vmem:[%s1723_s1 + $0x10] sm:$0xff] }
  0x10   : > { %814 = vmatpush.bf16.msra.mxu0 %v1353_v4  ;;  %v1367_v13 = vld [vmem:[%s1723_s1 + $0xa0] sm:$0xff]  ;;  %v1366_v17 = vld [vmem:[%s1723_s1 + $0x98] sm:$0xff]  ;;  %v1365_v21 = vld [vmem:[%s1723_s1 + $0x90] sm:$0xff] }
  0x11   : > { %842 = vmatpush.bf16.msra.mxu2 %v1369_v5  ;;  %v1359_v14 = vld [vmem:[%s1723_s1 + $0x60] sm:$0xff]  ;;  %v1358_v18 = vld [vmem:[%s1723_s1 + $0x58] sm:$0xff]  ;;  %v1357_v22 = vld [vmem:[%s1723_s1 + $0x50] sm:$0xff] }
  0x12   : > { %828 = vmatpush.bf16.msra.mxu1 %v1361_v6  ;;  %v1375_v15 = vld [vmem:[%s1723_s1 + $0xe0] sm:$0xff]  ;;  %v1374_v19 = vld [vmem:[%s1723_s1 + $0xd8] sm:$0xff]  ;;  %v1373_v23 = vld [vmem:[%s1723_s1 + $0xd0] sm:$0xff] }
  0x13   : > { %856 = vmatpush.bf16.msra.mxu3 %v1377_v7  ;;  %v1348_v24 = vld [vmem:[%s1723_s1 + $0x8] sm:$0xff]  ;;  %v1347_v28 = vld [vmem:[%s1723_s1] sm:$0xff]  ;;  %v1386_v30 = vld [vmem:[%s1723_s1 + $0x138] sm:$0xff] }
  0x14   : > { %815 = vmatpush.bf16.msra.mxu0 %v1352_v8  ;;  %v1364_v25 = vld [vmem:[%s1723_s1 + $0x88] sm:$0xff]  ;;  %v1363_v29 = vld [vmem:[%s1723_s1 + $0x80] sm:$0xff]  ;;  %v1402_v31 = vld [vmem:[%s1723_s1 + $0x1b8] sm:$0xff] }
  0x15   : > { %843 = vmatpush.bf16.msra.mxu2 %v1368_v9  ;;  %v1356_v26 = vld [vmem:[%s1723_s1 + $0x48] sm:$0xff]  ;;  %v1355_v32 = vld [vmem:[%s1723_s1 + $0x40] sm:$0xff]  ;;  %v1394_v38 = vld [vmem:[%s1723_s1 + $0x178] sm:$0xff] }
  0x16   : > { %829 = vmatpush.bf16.msra.mxu1 %v1360_v10  ;;  %v1372_v27 = vld [vmem:[%s1723_s1 + $0xc8] sm:$0xff]  ;;  %v1371_v33 = vld [vmem:[%s1723_s1 + $0xc0] sm:$0xff]  ;;  %v1410_v39 = vld [vmem:[%s1723_s1 + $0x1f8] sm:$0xff] }
  0x17   : > { %857 = vmatpush.bf16.msra.mxu3 %v1376_v11  ;;  %v1014_v34 = vld [vmem:[%s1560_s23] sm:$0xf]  ;;  %v1342_v35 = vld [vmem:[%s1560_s23 + $0x20] sm:$0xf0]  ;;  %v1022_v36 = vld [vmem:[%s1560_s23 + $0x8] sm:$0xf] }
  0x18   : > { %816 = vmatpush.bf16.msra.mxu0 %v1351_v12  ;;  %v1343_v37 = vld [vmem:[%s1560_s23 + $0x28] sm:$0xf0]  ;;  %v1338_v40 = vld [vmem:[%s1560_s23 + $0x4] sm:$0xf]  ;;  %v1016_v41 = vld [vmem:[%s1560_s23 + $0x24] sm:$0xf0]  ;;  %v1015_v44 = vor.u32 %v1342_v35, %v1014_v34 }
  0x19   : > { %844 = vmatpush.bf16.msra.mxu2 %v1367_v13  ;;  %v1339_v42 = vld [vmem:[%s1560_s23 + $0xc] sm:$0xf]  ;;  %v1024_v43 = vld [vmem:[%s1560_s23 + $0x2c] sm:$0xf0]  ;;  %v1023_v45 = vor.u32 %v1343_v37, %v1022_v36  ;;  %v1019_v48 = vor.u32 %v1338_v40, %v1016_v41  ;;  %v1383_v56 = vld [vmem:[%s1723_s1 + $0x120] sm:$0xff] }
  0x1a   : > { %830 = vmatpush.bf16.msra.mxu1 %v1359_v14  ;;  %v1385_v46 = vld [vmem:[%s1723_s1 + $0x130] sm:$0xff]  ;;  %v1027_v49 = vor.u32 %v1339_v42, %v1024_v43  ;;  %v1384_v52 = vld [vmem:[%s1723_s1 + $0x128] sm:$0xff]  ;;  %v1399_v57 = vld [vmem:[%s1723_s1 + $0x1a0] sm:$0xff] }
  0x1b   : > { %858 = vmatpush.bf16.msra.mxu3 %v1375_v15  ;;  %v1401_v47 = vld [vmem:[%s1723_s1 + $0x1b0] sm:$0xff]  ;;  %v1400_v53 = vld [vmem:[%s1723_s1 + $0x1a8] sm:$0xff]  ;;  %v1391_v58 = vld [vmem:[%s1723_s1 + $0x160] sm:$0xff] }
  0x1c   : > { %817 = vmatpush.bf16.msra.mxu0 %v1350_v16  ;;  %v1393_v50 = vld [vmem:[%s1723_s1 + $0x170] sm:$0xff]  ;;  %v1392_v54 = vld [vmem:[%s1723_s1 + $0x168] sm:$0xff]  ;;  %v1407_v59 = vld [vmem:[%s1723_s1 + $0x1e0] sm:$0xff] }
  0x1d   : > { %845 = vmatpush.bf16.msra.mxu2 %v1366_v17  ;;  %v1409_v51 = vld [vmem:[%s1723_s1 + $0x1f0] sm:$0xff]  ;;  %v1408_v55 = vld [vmem:[%s1723_s1 + $0x1e8] sm:$0xff]  ;;  %v1382_v60 = vld [vmem:[%s1723_s1 + $0x118] sm:$0xff] }
  0x1e   : > { %831 = vmatpush.bf16.msra.mxu1 %v1358_v18  ;;  %v1398_v61 = vld [vmem:[%s1723_s1 + $0x198] sm:$0xff]  ;;  %v1381_v0 = vld [vmem:[%s1723_s1 + $0x110] sm:$0xff]  ;;  %v1380_v4 = vld [vmem:[%s1723_s1 + $0x108] sm:$0xff] }
  0x1f   : > { %859 = vmatpush.bf16.msra.mxu3 %v1374_v19  ;;  %v1390_v62 = vld [vmem:[%s1723_s1 + $0x158] sm:$0xff]  ;;  %v1397_v1 = vld [vmem:[%s1723_s1 + $0x190] sm:$0xff]  ;;  %v1396_v5 = vld [vmem:[%s1723_s1 + $0x188] sm:$0xff] }
  0x20   : > { %818 = vmatpush.bf16.msra.mxu0 %v1349_v20  ;;  %v1406_v63 = vld [vmem:[%s1723_s1 + $0x1d8] sm:$0xff]  ;;  %v1389_v2 = vld [vmem:[%s1723_s1 + $0x150] sm:$0xff]  ;;  %v1388_v6 = vld [vmem:[%s1723_s1 + $0x148] sm:$0xff] }
  0x21   : > { %846 = vmatpush.bf16.msra.mxu2 %v1365_v21  ;;  %v1405_v3 = vld [vmem:[%s1723_s1 + $0x1d0] sm:$0xff]  ;;  %v1404_v7 = vld [vmem:[%s1723_s1 + $0x1c8] sm:$0xff]  ;;  %v1379_v8 = vld [vmem:[%s1723_s1 + $0x100] sm:$0xff] }
  0x22   : > { %832 = vmatpush.bf16.msra.mxu1 %v1357_v22  ;;  %v1395_v9 = vld [vmem:[%s1723_s1 + $0x180] sm:$0xff]  ;;  %v1418_v10 = vld [vmem:[%s1723_s1 + $0x238] sm:$0xff]  ;;  %v1030_v11 = vld [vmem:[%s1560_s23 + $0x10] sm:$0xf] }
  0x23   : > { %860 = vmatpush.bf16.msra.mxu3 %v1373_v23  ;;  %v1344_v12 = vld [vmem:[%s1560_s23 + $0x30] sm:$0xf0]  ;;  %v1038_v13 = vld [vmem:[%s1560_s23 + $0x18] sm:$0xf]  ;;  %v1345_v14 = vld [vmem:[%s1560_s23 + $0x38] sm:$0xf0] }
  0x24   : > { %819 = vmatpush.bf16.msra.mxu0 %v1348_v24  ;;  %v1387_v15 = vld [vmem:[%s1723_s1 + $0x140] sm:$0xff]  ;;  %v1340_v17 = vld [vmem:[%s1560_s23 + $0x14] sm:$0xf]  ;;  %v1032_v18 = vld [vmem:[%s1560_s23 + $0x34] sm:$0xf0]  ;;  %v1031_v21 = vor.u32 %v1344_v12, %v1030_v11  ;;  %v1039_v22 = vor.u32 %v1345_v14, %v1038_v13 }
  0x25   : > { %847 = vmatpush.bf16.msra.mxu2 %v1364_v25  ;;  %v1403_v16 = vld [vmem:[%s1723_s1 + $0x1c0] sm:$0xff]  ;;  %v1341_v19 = vld [vmem:[%s1560_s23 + $0x1c] sm:$0xf]  ;;  %v1035_v23 = vor.u32 %v1340_v17, %v1032_v18  ;;  %v1417_v25 = vld [vmem:[%s1723_s1 + $0x230] sm:$0xff] }
  0x26   : > { %833 = vmatpush.bf16.msra.mxu1 %v1356_v26  ;;  %v1040_v20 = vld [vmem:[%s1560_s23 + $0x3c] sm:$0xf0]  ;;  %v1416_v26 = vld [vmem:[%s1723_s1 + $0x228] sm:$0xff] }
  0x27   : > { %861 = vmatpush.bf16.msra.mxu3 %v1372_v27  ;;  %v1043_v24 = vor.u32 %v1341_v19, %v1040_v20  ;;  %v1415_v27 = vld [vmem:[%s1723_s1 + $0x220] sm:$0xff] }
  0x28   : > { %820 = vmatpush.bf16.msra.mxu0 %v1347_v28  ;;  %v1414_v28 = vld [vmem:[%s1723_s1 + $0x218] sm:$0xff] }
  0x29   : > { %848 = vmatpush.bf16.msra.mxu2 %v1363_v29  ;;  %v1413_v29 = vld [vmem:[%s1723_s1 + $0x210] sm:$0xff] }
  0x2a   : > { %834 = vmatpush.bf16.msra.mxu1 %v1355_v32  ;;  %v1046_v32 = vld [vmem:[%s1560_s23 + $0x20] sm:$0xf] }
  0x2b   : > { %862 = vmatpush.bf16.msra.mxu3 %v1371_v33  ;;  %821 = vmatmul.bf16.vlgmr.msra.gmra.mxu0 %v1015_v44  ;;  %v1346_v33 = vld [vmem:[%s1560_s23 + $0x40] sm:$0xf0]  ;;  %s1011_s23 = sshll.u32 %s1727_s11, 2 }
  0x2c   : > { %869 = vmatpush.bf16.msrb.mxu0 %v1386_v30  ;;  %849 = vmatmul.bf16.vlgmr.msra.gmra.mxu2 %v1023_v45  ;;  %v1412_v30 = vld [vmem:[%s1723_s1 + $0x208] sm:$0xff]  ;;  %v1047_v34 = vor.u32 %v1346_v33, %v1046_v32  ;;  %s175_s20 = scalar_lea.vmem %s1725_s3, %s1011_s23 }
  0x2d   : > { %897 = vmatpush.bf16.msrb.mxu2 %v1402_v31  ;;  %835 = vmatmul.bf16.vlgmr.msra.gmra.mxu1 %v1019_v48  ;;  %v1411_v31 = vld [vmem:[%s1723_s1 + $0x200] sm:$0xff] }
  0x2e   : > { %883 = vmatpush.bf16.msrb.mxu1 %v1394_v38  ;;  %863 = vmatmul.bf16.vlgmr.msra.gmra.mxu3 %v1027_v49  ;;  %v1433_v38 = vld [vmem:[%s1724_s2] ss:$0 sm:$0xff] }
  0x2f   : > { %911 = vmatpush.bf16.msrb.mxu3 %v1410_v39 }
  0x30   : > { %870 = vmatpush.bf16.msrb.mxu0 %v1385_v46 }
  0x31   : > { %898 = vmatpush.bf16.msrb.mxu2 %v1401_v47 }
  0x32   : > { %884 = vmatpush.bf16.msrb.mxu1 %v1393_v50 }
  0x33   : > { %912 = vmatpush.bf16.msrb.mxu3 %v1409_v51 }
  0x34   : > { %871 = vmatpush.bf16.msrb.mxu0 %v1384_v52 }
  0x35   : > { %899 = vmatpush.bf16.msrb.mxu2 %v1400_v53 }
  0x36   : > { %885 = vmatpush.bf16.msrb.mxu1 %v1392_v54 }
  0x37   : > { %913 = vmatpush.bf16.msrb.mxu3 %v1408_v55 }
  0x38   : > { %872 = vmatpush.bf16.msrb.mxu0 %v1383_v56 }
  0x39   : > { %900 = vmatpush.bf16.msrb.mxu2 %v1399_v57 }
  0x3a   : > { %886 = vmatpush.bf16.msrb.mxu1 %v1391_v58 }
  0x3b   : > { %914 = vmatpush.bf16.msrb.mxu3 %v1407_v59 }
  0x3c   : > { %873 = vmatpush.bf16.msrb.mxu0 %v1382_v60 }
  0x3d   : > { %901 = vmatpush.bf16.msrb.mxu2 %v1398_v61 }
  0x3e   : > { %887 = vmatpush.bf16.msrb.mxu1 %v1390_v62 }
  0x3f   : > { %915 = vmatpush.bf16.msrb.mxu3 %v1406_v63 }
  0x40   : > { %874 = vmatpush.bf16.msrb.mxu0 %v1381_v0 }
  0x41   : > { %902 = vmatpush.bf16.msrb.mxu2 %v1397_v1 }
  0x42   : > { %888 = vmatpush.bf16.msrb.mxu1 %v1389_v2 }
  0x43   : > { %916 = vmatpush.bf16.msrb.mxu3 %v1405_v3 }
  0x44   : > { %875 = vmatpush.bf16.msrb.mxu0 %v1380_v4 }
  0x45   : > { %903 = vmatpush.bf16.msrb.mxu2 %v1396_v5 }
  0x46   : > { %889 = vmatpush.bf16.msrb.mxu1 %v1388_v6 }
  0x47   : > { %917 = vmatpush.bf16.msrb.mxu3 %v1404_v7 }
  0x48   : > { %876 = vmatpush.bf16.msrb.mxu0 %v1379_v8 }
  0x49   : > { %904 = vmatpush.bf16.msrb.mxu2 %v1395_v9 }
  0x4a   : > { %890 = vmatpush.bf16.msrb.mxu1 %v1387_v15 }
  0x4b   : > { %918 = vmatpush.bf16.msrb.mxu3 %v1403_v16  ;;  %877 = vmatmul.bf16.vlgmr.msrb.gmra.mxu0 %v1031_v21 }
  0x4c   : > { %925 = vmatpush.bf16.msra.mxu0 %v1418_v10  ;;  %905 = vmatmul.bf16.vlgmr.msrb.gmra.mxu2 %v1039_v22 }
  0x4d   : > { %891 = vmatmul.bf16.vlgmr.msrb.gmra.mxu1 %v1035_v23 }
  0x4e   : > { %919 = vmatmul.bf16.vlgmr.msrb.gmra.mxu3 %v1043_v24 }
  0x50   : > { %926 = vmatpush.bf16.msra.mxu0 %v1417_v25 }
  0x54   : > { %927 = vmatpush.bf16.msra.mxu0 %v1416_v26 }
  0x58   : > { %928 = vmatpush.bf16.msra.mxu0 %v1415_v27 }
  0x5c   : > { %929 = vmatpush.bf16.msra.mxu0 %v1414_v28 }
  0x60   : > { %930 = vmatpush.bf16.msra.mxu0 %v1413_v29 }
  0x64   : > { %931 = vmatpush.bf16.msra.mxu0 %v1412_v30 }
  0x68   : > { %932 = vmatpush.bf16.msra.mxu0 %v1411_v31 }
  0x6b   : > { %933 = vmatmul.bf16.vlgmr.msra.gmra.mxu0 %v1047_v34 }
  0xa8   : > { %v822_v35 = vpop.f32.mrf.mxu0 }
  0xa9   : > { %v823_v41 = vadd.f32 %v1433_v38, %v822_v35 }
  0xaa   : > { %v836_v36 = vpop.f32.mrf.mxu1 }
  0xab   : > { %v837_v43 = vadd.f32 %v836_v36, %v823_v41 }
  0xaf   : > { %v850_v37 = vpop.f32.mrf.mxu2 }
  0xb0   : > { %v824_v39 = vpop.f32.mrf.mxu0  ;;  %v851_v46 = vadd.f32 %v850_v37, %v837_v43 }
  0xb1   : > { %v864_v40 = vpop.f32.mrf.mxu3  ;;  %v825_v47 = vadd.f32 %v1433_v38, %v824_v39 }
  0xb2   : > { %v838_v42 = vpop.f32.mrf.mxu1  ;;  %v865_v49 = vadd.f32 %v864_v40, %v851_v46 }
  0xb3   : > { %v839_v50 = vadd.f32 %v838_v42, %v825_v47 }
  0xb7   : > { %v852_v44 = vpop.f32.mrf.mxu2 }
  0xb8   : > { %v853_v53 = vadd.f32 %v852_v44, %v839_v50 }
  0xb9   : > { %v866_v48 = vpop.f32.mrf.mxu3 }
  0xba   : > { %v867_v57 = vadd.f32 %v866_v48, %v853_v53 }
  0xc8   : > { %v878_v45 = vpop.f32.mrf.mxu0 }
  0xc9   : > { %v879_v54 = vadd.f32 %v878_v45, %v865_v49 }
  0xca   : > { %v892_v51 = vpop.f32.mrf.mxu1 }
  0xcb   : > { %v893_v58 = vadd.f32 %v892_v51, %v879_v54 }
  0xcf   : > { %v906_v52 = vpop.f32.mrf.mxu2 }
  0xd0   : > { %v880_v55 = vpop.f32.mrf.mxu0  ;;  %v907_v61 = vadd.f32 %v906_v52, %v893_v58 }
  0xd1   : > { %v920_v56 = vpop.f32.mrf.mxu3  ;;  %v881_v59 = vadd.f32 %v880_v55, %v867_v57 }
  0xd2   : > { %v894_v60 = vpop.f32.mrf.mxu1  ;;  %v921_v1 = vadd.f32 %v920_v56, %v907_v61 }
  0xd3   : > { %v895_v0 = vadd.f32 %v894_v60, %v881_v59 }
  0xd7   : > { %v908_v62 = vpop.f32.mrf.mxu2 }
  0xd8   : > { %v909_v2 = vadd.f32 %v908_v62, %v895_v0 }
  0xd9   : > { %v922_v3 = vpop.f32.mrf.mxu3 }
  0xda   : > { %v923_v5 = vadd.f32 %v922_v3, %v909_v2 }
  0xe8   : > { %v934_v63 = vpop.f32.mrf.mxu0 }
  0xe9   : > { %v935_v4 = vadd.f32 %v934_v63, %v921_v1 }
  0xeb   : > { %v939_v7 = vmul.f32 0.2, %v935_v4 }
  0xed   : > { %v941_v10 = vmax.f32 %v935_v4, %v939_v7 }
  0xf0   : > { %v936_v6 = vpop.f32.mrf.mxu0 }
  0xf1   : > { %v937_v8 = vadd.f32 %v936_v6, %v923_v5 }
  0xf3   : > { %v940_v9 = vmul.f32 0.2, %v937_v8 }
  0xf5   : > { %v942_v11 = vmax.f32 %v937_v8, %v940_v9 }
  0xf7   : > { %v1422_v12 = vpack.c.bf16 %v942_v11, %v941_v10 }
  0xf9   : > { %1423 = vst [vmem:[%s175_s20] sm:$0xff] %v1422_v12  }
  0xfa PF: > { %s13_s12 = sadd.s32 1, %s1440_s12  }
  0xfb   : > { %p10_p4 = scmp.ge.s32.totalorder %s13_s12, 4  }
  0xfd   :  { %12 = sbr.rel (!%p10_p4) target bundleno = 1 (0x1), region = 62 }

// kernel: self_ig_block.3
= control target key start
LH: loop header
LB: loop body
LE: loop exit
PB: predicated region body
PF: predicated region fallthrough
CT: control target
= control target key end

     0   :  { %s1111_s30 = smov 0   ;;  %s1281_s0 = inlined_call_operand.vmem [shape: bf16[32,200], index: 0, kind: input, shape index: {}]   ;;  %s1282_s1 = inlined_call_operand.vmem [shape: bf16[32,128], index: 1, kind: input, shape index: {}]   ;;  %s1283_s2 = inlined_call_operand.vmem [shape: bf16[200,16], index: 2, kind: input, shape index: {}]   ;;  %s1284_s3 = inlined_call_operand.vmem [shape: f32[1,16], index: 3, kind: input, shape index: {}]   ;;  %s1285_s4 = inlined_call_operand.vmem [shape: f32[16,16], index: 4, kind: input, shape index: {}]   ;;  %s1286_s5 = inlined_call_operand.vmem [shape: f32[16,384], index: 5, kind: input, shape index: {}]   ;;  %s1287_s6 = inlined_call_operand.vmem [shape: bf16[128,128], index: 6, kind: input, shape index: {}]   ;;  %s1288_s7 = inlined_call_operand.vmem [shape: f32[1,128], index: 7, kind: input, shape index: {}]   ;;  %s1289_s8 = inlined_call_operand.vmem [shape: f32[1,128], index: 8, kind: input, shape index: {}]   ;;  %s1290_s9 = inlined_call_operand.vmem [shape: f32[32,128], index: 9, kind: output, shape index: {}]  }
   0x1 LB: > { %s895_s10 = sadd.s32 4294967295, %s1059_s30   ;;  %p899_p0 = scmp.ge.s32.totalorder %s1059_s30, 1  ;;  %s1059_s30 = sphi %s1111_s30, %s19_s30  }
   0x2   : > { %p300_p1 = scmp.lt.s32.totalorder %s1059_s30, 3 }
   0x4   : > { %p301_p2 = pnand %p899_p0, %p300_p1 }
   0x5   : > { %s900_s15 = sshll.u32 (!%p301_p2), %s895_s10, 1 }
   0x6   : > { %304 = sbr.rel (%p301_p2) target bundleno = 514 (0x202), region = 56  ;;  %p343_p3 = scmp.lt.s32.totalorder (!%p301_p2), %s900_s15, 3 }
   0xb   : > { %v1020_v0 = vld [vmem:[%s1283_s2 + $0x38] sm:$0xff]  ;;  %v388_v1 = vld [vmem:[%s1283_s2 + $0x60] sm:$0xf]  ;;  %v1019_v3 = vld [vmem:[%s1283_s2 + $0x30] sm:$0xff]  ;;  %vm481_vm0 = vcmask 1043456   ;;  %s1292_s15 = smov (!%p343_p3, %s900_s15), 3 }
   0xc   : > { %v451_v2 = vunpack.c.l.b16 %v388_v1  ;;  %485 = vmatpush.bf16.msra.mxu0 %v1020_v0  ;;  %v1018_v6 = vld [vmem:[%s1283_s2 + $0x28] sm:$0xff]  ;;  %v1024_v7 = vld [vmem:[%s1283_s2 + $0x58] sm:$0xff]  ;;  %v1017_v8 = vld [vmem:[%s1283_s2 + $0x20] sm:$0xff]  ;;  %s1010_s26 = sshll.u32 %s1292_s15, 3  ;;  %vm477_vm1 = vcmask 588800   ;;  %s904_s25 = sshll.u32 %s1292_s15, 2 }
   0xd   : > { %v1023_v9 = vld [vmem:[%s1283_s2 + $0x50] sm:$0xff]  ;;  %v1016_v10 = vld [vmem:[%s1283_s2 + $0x18] sm:$0xff]  ;;  %v1022_v11 = vld [vmem:[%s1283_s2 + $0x48] sm:$0xff]  ;;  %s347_s13 = scalar_lea.vmem %s1281_s0, %s1010_s26  ;;  %s1203_s11 = scalar_lea.vmem %s1282_s1, %s904_s25  ;;  %vm517_vm2 = vcmask 130048  }
   0xe   : > { %v464_v4 = vpack.c.b16 %v451_v2, %v451_v2  ;;  %v1015_v12 = vld [vmem:[%s1283_s2 + $0x10] sm:$0xff]  ;;  %v1021_v13 = vld [vmem:[%s1283_s2 + $0x40] sm:$0xff]  ;;  %v911_v15 = vld [vmem:[%s347_s13 + $0x8] sm:$0xf0]  ;;  %s359_s10 = scalar_lea.vmem %s1290_s9, %s1010_s26 }
   0xf   : > { %v1011_v14 = vld [vmem:[%s347_s13 + $0x4] sm:$0xf]  ;;  %v1014_v17 = vld [vmem:[%s1283_s2 + $0x8] sm:$0xff]  ;;  %v909_v19 = vld [vmem:[%s347_s13] sm:$0xf] }
  0x10   : > { %v483_v5 = vsel %vm481_vm0, %v464_v4, 0  ;;  %486 = vmatpush.bf16.msra.mxu0 %v1019_v3  ;;  %v914_v16 = vor.u32 %v1011_v14, %v911_v15  ;;  %v1013_v18 = vld [vmem:[%s1283_s2] sm:$0xff]  ;;  %v1012_v20 = vld [vmem:[%s347_s13 + $0x4] sm:$0xf0]  ;;  %v1033_v24 = vld [vmem:[%s1287_s6 + $0x38] sm:$0xff] }
  0x11   : > { %502 = vmatpush.bf16.msra.mxu1 %v483_v5  ;;  %v910_v21 = vor.u32 %v1012_v20, %v909_v19  ;;  %v516_v22 = vld [vmem:[%s1285_s4 + $0x8] sm:$0xff]  ;;  %v515_v23 = vld [vmem:[%s1285_s4] sm:$0xff]  ;;  %v1032_v25 = vld [vmem:[%s1287_s6 + $0x30] sm:$0xff] }
  0x12   : > { %538 = vmatpush.msra.mxu2 %v516_v22  ;;  %v1031_v26 = vld [vmem:[%s1287_s6 + $0x28] sm:$0xff]  ;;  %v1030_v27 = vld [vmem:[%s1287_s6 + $0x20] sm:$0xff]  ;;  %v1029_v28 = vld [vmem:[%s1287_s6 + $0x18] sm:$0xff] }
  0x13   : > { %v1028_v29 = vld [vmem:[%s1287_s6 + $0x10] sm:$0xff]  ;;  %v1027_v30 = vld [vmem:[%s1287_s6 + $0x8] sm:$0xff]  ;;  %v1042_v31 = vld [vmem:[%s1284_s3] ss:$0 sm:$0xff] }
  0x14   : > { %487 = vmatpush.bf16.msra.mxu0 %v1018_v6  ;;  %539 = vmatpush.msra.mxu2 %v515_v23  ;;  %v1026_v34 = vld [vmem:[%s1287_s6] sm:$0xff]  ;;  %v675_v45 = vld [vmem:[%s1287_s6 + $0x38] sm:$0xff]   ;;  %v572_v46 = vld [vmem:[%s1286_s5 + $0x8] sm:$0xff] }
  0x15   : > { %503 = vmatpush.bf16.msra.mxu1 %v1024_v7  ;;  %v1025_v37 = vld [vmem:[%s1203_s11] sm:$0xff]  ;;  %v765_v47 = vunpack.c.h.bf16 %v675_v45  ;;  %v764_v48 = vunpack.c.l.bf16 %v675_v45  ;;  %v673_v49 = vld [vmem:[%s1287_s6 + $0x30] sm:$0xff]   ;;  %v671_v52 = vld [vmem:[%s1287_s6 + $0x28] sm:$0xff]  }
  0x16   : > { %v575_v44 = vld [vmem:[%s1286_s5 + $0x20] sm:$0xff]  ;;  %v763_v50 = vunpack.c.h.bf16 %v673_v49  ;;  %v762_v51 = vunpack.c.l.bf16 %v673_v49  ;;  %v761_v53 = vunpack.c.h.bf16 %v671_v52  ;;  %v760_v54 = vunpack.c.l.bf16 %v671_v52  ;;  %v574_v57 = vld [vmem:[%s1286_s5 + $0x18] sm:$0xff]  ;;  %v665_v63 = vld [vmem:[%s1287_s6 + $0x10] sm:$0xff]  }
  0x17   : > { %620 = vmatpush.msrb.mxu2 %v575_v44  ;;  %v669_v55 = vld [vmem:[%s1287_s6 + $0x20] sm:$0xff]   ;;  %597 = vmatpush.msra.mxu3 %v574_v57  ;;  %v667_v60 = vld [vmem:[%s1287_s6 + $0x18] sm:$0xff]   ;;  %v755_v0 = vunpack.c.h.bf16 %v665_v63  ;;  %v754_v1 = vunpack.c.l.bf16 %v665_v63  ;;  %v663_v2 = vld [vmem:[%s1287_s6 + $0x8] sm:$0xff]  }
  0x18   : > { %488 = vmatpush.bf16.msra.mxu0 %v1017_v8  ;;  %v759_v56 = vunpack.c.h.bf16 %v669_v55  ;;  %v758_v58 = vunpack.c.l.bf16 %v669_v55  ;;  %v571_v59 = vld [vmem:[%s1286_s5] sm:$0xff]  ;;  %v757_v61 = vunpack.c.h.bf16 %v667_v60  ;;  %v756_v62 = vunpack.c.l.bf16 %v667_v60  ;;  %v576_v5 = vld [vmem:[%s1286_s5 + $0x28] sm:$0xff]  ;;  %v573_v7 = vld [vmem:[%s1286_s5 + $0x10] sm:$0xff] }
  0x19   : > { %504 = vmatpush.bf16.msra.mxu1 %v1023_v9  ;;  %621 = vmatpush.msrb.mxu2 %v572_v46  ;;  %v753_v3 = vunpack.c.h.bf16 %v663_v2  ;;  %v752_v4 = vunpack.c.l.bf16 %v663_v2  ;;  %v661_v6 = vld [vmem:[%s1287_s6] sm:$0xff]  }
  0x1a   : > { %598 = vmatpush.msra.mxu3 %v571_v59  ;;  %v751_v9 = vunpack.c.h.bf16 %v661_v6 }
  0x1c   : > { %489 = vmatpush.bf16.msra.mxu0 %v1016_v10  ;;  %643 = vmatpush.msrb.mxu3 %v576_v5 }
  0x1d   : > { %505 = vmatpush.bf16.msra.mxu1 %v1022_v11  ;;  %v750_v11 = vunpack.c.l.bf16 %v661_v6 }
  0x1e   : > { %644 = vmatpush.msrb.mxu3 %v573_v7 }
  0x20   : > { %490 = vmatpush.bf16.msra.mxu0 %v1015_v12 }
  0x21   : > { %506 = vmatpush.bf16.msra.mxu1 %v1021_v13 }
  0x24   : > { %963 = vmatmul.msk.bf16.vlgmr.msra.gmra.mxu1 %vm477_vm1, %v914_v16  ;;  %491 = vmatpush.bf16.msra.mxu0 %v1014_v17 }
  0x25   : > { %730 = vmatpush.bf16.msrb.mxu1 %v1033_v24 }
  0x28   : > { %492 = vmatpush.bf16.msra.mxu0 %v1013_v18 }
  0x29   : > { %731 = vmatpush.bf16.msrb.mxu1 %v1032_v25 }
  0x2b   : > { %493 = vmatmul.bf16.vlgmr.msra.gmra.mxu0 %v910_v21 }
  0x2d   : > { %732 = vmatpush.bf16.msrb.mxu1 %v1031_v26 }
  0x31   : > { %733 = vmatpush.bf16.msrb.mxu1 %v1030_v27  ;;  %v658_v27 = vld [vmem:[%s1203_s11] sm:$0xff]  }
  0x35   : > { %734 = vmatpush.bf16.msrb.mxu1 %v1029_v28 }
  0x39   : > { %735 = vmatpush.bf16.msrb.mxu1 %v1028_v29  ;;  %v744_v29 = vunpack.c.l.bf16 %v658_v27 }
  0x3d   : > { %736 = vmatpush.bf16.msrb.mxu1 %v1027_v30 }
  0x41   : > { %737 = vmatpush.bf16.msrb.mxu1 %v1026_v34 }
  0x44   : > { %738 = vmatmul.bf16.vlgmr.msrb.gmra.mxu1 %v1025_v37 }
  0xa1   : > { %v508_v32 = vpop.f32.mrf.mxu1 }
  0xa8   : > { %v494_v33 = vpop.f32.mrf.mxu0 }
  0xa9   : > { %v495_v35 = vadd.f32 %v1042_v31, %v494_v33  ;;  %v510_v41 = vpop.f32.mrf.mxu1 }
  0xab   : > { %v1205_v36 = vadd.f32 %v508_v32, %v495_v35  ;;  %v745_v35 = vunpack.c.h.bf16 %v658_v27 }
  0xad   : > { %v513_v38 = vmul.f32 %v1205_v36, %v1205_v36 }
  0xaf   : > { %964 = vmatmul.msk.f32.vlgmr.msra.gmra.mxu2 %vm517_vm2, %v513_v38 }
  0xb0   : > { %v496_v39 = vpop.f32.mrf.mxu0  ;;  %766 = vmatpush.msra.mxu2 %v765_v47 }
  0xb1   : > { %v497_v40 = vadd.f32 %v1042_v31, %v496_v39 }
  0xb2   : > { %767 = vmatpush.msra.mxu2 %v764_v48 }
  0xb3   : > { %v1211_v42 = vadd.f32 %v510_v41, %v497_v40 }
  0xb4   : > { %768 = vmatpush.msra.mxu2 %v763_v50 }
  0xb5   : > { %v514_v43 = vmul.f32 %v1211_v42, %v1211_v42 }
  0xb6   : > { %769 = vmatpush.msra.mxu2 %v762_v51 }
  0xb7   : > { %965 = vmatmul.msk.f32.gmra.mxu2 %vm517_vm2, %v514_v43 }
  0xb8   : > { %770 = vmatpush.msra.mxu2 %v761_v53 }
  0xba   : > { %771 = vmatpush.msra.mxu2 %v760_v54 }
  0xbc   : > { %772 = vmatpush.msra.mxu2 %v759_v56  ;;  %v1043_v56 = vld [vmem:[%s1288_s7] ss:$0 sm:$0xff] }
  0xbe   : > { %773 = vmatpush.msra.mxu2 %v758_v58 }
  0xc0   : > { %774 = vmatpush.msra.mxu2 %v757_v61  ;;  %v1044_v61 = vld [vmem:[%s1289_s8] ss:$0 sm:$0xff] }
  0xc1   : > { %v739_v30 = vpop.f32.mrf.mxu1 }
  0xc2   : > { %775 = vmatpush.msra.mxu2 %v756_v62  ;;  %v746_v33 = vsub.f32 %v744_v29, %v739_v30 }
  0xc4   : > { %776 = vmatpush.msra.mxu2 %v755_v0  ;;  %v748_v34 = vmul.f32 %v746_v33, %v746_v33 }
  0xc6   : > { %777 = vmatpush.msra.mxu2 %v754_v1 }
  0xc8   : > { %778 = vmatpush.msra.mxu2 %v753_v3 }
  0xca   : > { %779 = vmatpush.msra.mxu2 %v752_v4 }
  0xcc   : > { %780 = vmatpush.msra.mxu2 %v751_v9 }
  0xce   : > { %781 = vmatpush.msra.mxu2 %v750_v11 }
 0x132   : > { %v541_v8 = vpop.f32.mrf.mxu2 }
 0x133   : > { %v547_v10 = vmax.f32 %v541_v8, 1e-24 }
 0x135   : > { %1045 = vrsqrt.f32 %v547_v10  ;;  %vm555_vm4 = vweird.f32 %v547_v10 }
 0x13a   : > { %v544_v12 = vpop.f32.mrf.mxu2 }
 0x13b   : > { %v1046_v13 = vpop.eup %1045  ;;  %v548_v14 = vmax.f32 %v544_v12, 1e-24 }
 0x13c   : > { %v550_v15 = vmul.f32 %v1046_v13, %v547_v10  ;;  %vm556_vm3 = vweird.f32 %v1046_v13 }
 0x13d   : > { %1047 = vrsqrt.f32 %v548_v14  ;;  %vm557_vm5 = vmor %vm555_vm4, %vm556_vm3  ;;  %vm565_vm7 = vweird.f32 %v548_v14 }
 0x13e   : > { %v551_v16 = vmul.f32 %v1046_v13, %v550_v15 }
 0x140   : > { %v552_v17 = vmul.f32 0.5, %v551_v16 }
 0x142   : > { %v553_v18 = vsub.f32 1.5, %v552_v17 }
 0x143   : > { %v1048_v19 = vpop.eup %1047 }
 0x144   : > { %v560_v20 = vmul.f32 %v1048_v19, %v548_v14  ;;  %v554_v21 = vmul.f32 %v1046_v13, %v553_v18  ;;  %vm566_vm6 = vweird.f32 %v1048_v19 }
 0x145   : > { %vm567_vm8 = vmor %vm565_vm7, %vm566_vm6 }
 0x146   : > { %v561_v22 = vmul.f32 %v1048_v19, %v560_v20  ;;  %v558_v23 = vsel %vm557_vm5, %v1046_v13, %v554_v21 }
 0x147   : > { %v569_v24 = vmul.f32 %v558_v23, %v1205_v36  ;;  %v741_v36 = vpop.f32.mrf.mxu1 }
 0x148   : > { %v562_v25 = vmul.f32 0.5, %v561_v22  ;;  %v747_v37 = vsub.f32 %v745_v35, %v741_v36 }
 0x149   : > { %966 = vmatmul.msk.f32.vlgmr.msra.gmra.mxu3 %vm517_vm2, %v569_v24  ;;  %968 = vmatmul.msk.f32.vlgmr.msrb.gmra.mxu2 %vm517_vm2, %v569_v24 }
 0x14a   : > { %v563_v26 = vsub.f32 1.5, %v562_v25  ;;  %v749_v38 = vmul.f32 %v747_v37, %v747_v37 }
 0x14c   : > { %v564_v28 = vmul.f32 %v1048_v19, %v563_v26 }
 0x14e   : > { %v568_v31 = vsel %vm567_vm8, %v1048_v19, %v564_v28 }
 0x14f   : > { %v570_v32 = vmul.f32 %v568_v31, %v1211_v42 }
 0x151   : > { %967 = vmatmul.msk.f32.gmra.mxu3 %vm517_vm2, %v570_v32  ;;  %969 = vmatmul.msk.f32.gmra.mxu2 %vm517_vm2, %v570_v32 }
 0x159   : > { %970 = vmatmul.msk.f32.vlgmr.msrb.gmra.mxu3 %vm517_vm2, %v569_v24  ;;  %782 = vmatmul.f32.vlgmr.msra.gmra.mxu2 %v748_v34 }
 0x161   : > { %971 = vmatmul.msk.f32.gmra.mxu3 %vm517_vm2, %v570_v32  ;;  %785 = vmatmul.f32.gmra.mxu2 %v749_v38 }
 0x1cc   : > { %v623_v39 = vpop.f32.mrf.mxu2  ;;  %v600_v41 = vpop.f32.mrf.mxu3 }
 0x1cd   : > { %v652_v55 = vmul.f32 %v623_v39, %v600_v41 }
 0x1cf   : > { %v654_v63 = vmax.f32 %v652_v55, 0.0 }
 0x1d4   : > { %v626_v40 = vpop.f32.mrf.mxu2  ;;  %v603_v47 = vpop.f32.mrf.mxu3 }
 0x1d5   : > { %v653_v5 = vmul.f32 %v626_v40, %v603_v47 }
 0x1d7   : > { %v655_v10 = vmax.f32 %v653_v5, 0.0 }
 0x1dc   : > { %v783_v42 = vpop.f32.mrf.mxu2  ;;  %v646_v57 = vpop.f32.mrf.mxu3 }
 0x1dd   : > { %v784_v43 = vadd.f32 1e-05, %v783_v42  ;;  %v656_v2 = vmul.f32 %v654_v63, %v646_v57 }
 0x1df   : > { %1049 = vrsqrt.f32 %v784_v43  ;;  %vm795_vm10 = vweird.f32 %v784_v43 }
 0x1e4   : > { %v786_v44 = vpop.f32.mrf.mxu2  ;;  %v649_v9 = vpop.f32.mrf.mxu3 }
 0x1e5   : > { %v1050_v45 = vpop.eup %1049  ;;  %v787_v46 = vadd.f32 1e-05, %v786_v44  ;;  %v657_v12 = vmul.f32 %v655_v10, %v649_v9 }
 0x1e6   : > { %v790_v48 = vmul.f32 %v1050_v45, %v784_v43  ;;  %vm796_vm9 = vweird.f32 %v1050_v45 }
 0x1e7   : > { %1051 = vrsqrt.f32 %v787_v46  ;;  %vm797_vm11 = vmor %vm795_vm10, %vm796_vm9  ;;  %vm805_vm13 = vweird.f32 %v787_v46 }
 0x1e8   : > { %v791_v49 = vmul.f32 %v1050_v45, %v790_v48 }
 0x1ea   : > { %v792_v50 = vmul.f32 0.5, %v791_v49 }
 0x1ec   : > { %v793_v51 = vsub.f32 1.5, %v792_v50 }
 0x1ed   : > { %v1052_v52 = vpop.eup %1051 }
 0x1ee   : > { %v794_v53 = vmul.f32 %v1050_v45, %v793_v51  ;;  %v800_v54 = vmul.f32 %v1052_v52, %v787_v46  ;;  %vm806_vm12 = vweird.f32 %v1052_v52 }
 0x1ef   : > { %vm807_vm14 = vmor %vm805_vm13, %vm806_vm12 }
 0x1f0   : > { %v798_v58 = vsel %vm797_vm11, %v1050_v45, %v794_v53  ;;  %v801_v59 = vmul.f32 %v1052_v52, %v800_v54 }
 0x1f1   : > { %v809_v60 = vmul.f32 %v798_v58, %v746_v33 }
 0x1f2   : > { %v802_v62 = vmul.f32 0.5, %v801_v59 }
 0x1f3   : > { %v815_v0 = vmul.f32 %v1043_v56, %v809_v60 }
 0x1f4   : > { %v803_v1 = vsub.f32 1.5, %v802_v62 }
 0x1f5   : > { %v821_v3 = vadd.f32 %v1044_v61, %v815_v0 }
 0x1f6   : > { %v804_v4 = vmul.f32 %v1052_v52, %v803_v1 }
 0x1f7   : > { %v823_v6 = vmul.f32 %v821_v3, %v656_v2 }
 0x1f8   : > { %v808_v7 = vsel %vm807_vm14, %v1052_v52, %v804_v4 }
 0x1f9   : > { %825 = vst [vmem:[%s359_s10] sm:$0xff] %v823_v6  ;;  %v810_v8 = vmul.f32 %v808_v7, %v747_v37 }
 0x1fb   : > { %v816_v11 = vmul.f32 %v1043_v56, %v810_v8 }
 0x1fd   : > { %v822_v13 = vadd.f32 %v1044_v61, %v816_v11 }
 0x1ff   : > { %v824_v14 = vmul.f32 %v822_v13, %v657_v12 }
 0x201   : > { %826 = vst [vmem:[%s359_s10 + $0x8] sm:$0xff] %v824_v14 }
 0x202 PF: > { %s19_s30 = sadd.s32 1, %s1059_s30  }
 0x203   : > { %p16_p4 = scmp.ge.s32.totalorder %s19_s30, 4  }
 0x205   :  { %18 = sbr.rel (!%p16_p4) target bundleno = 1 (0x1), region = 89 }

</bundles_post_ra>
